<compile_context>
chip_gen: v6e
topology: v6e:2x2x1
jax: 0.10.0
libtpu: 0.0.40
codegen_flags: <defaults>
</compile_context>

<pallas_src>
import math
import functools

import jax
import jax.numpy as jnp
from jax.experimental import pallas as pl
from jax.experimental.pallas import tpu as pltpu


# ---------------------------------------------------------------------------
# Fused Pallas kernel
# ---------------------------------------------------------------------------

def _reprogramming_kernel(t_ref, kT_ref, v_ref, wq_ref, bq_ref, wo_ref, bo_ref,
                          o_ref, *, n_heads):
    # Per grid step g:
    #   t_ref  : (row_tile, d_model)   query rows (batches flattened into rows)
    #   kT_ref : (H, E, S)             hoisted, pre-projected keys   (resident)
    #   v_ref  : (H, S, E)             hoisted, pre-projected values (resident)
    #   wq_ref : (H, d_model, E)       per-head query weights, scale folded in
    #   bq_ref : (H, 1, E)             per-head query bias,   scale folded in
    #   wo_ref : (H, E, d_llm)         per-head output-projection weights
    #   bo_ref : (1, d_llm)            output-projection bias
    #   o_ref  : (row_tile, d_llm)     lane-dense output block
    x = t_ref[...]                                        # (R, d_model)

    acc = None
    for h in range(n_heads):        # static unroll; only leading-axis ref slices
        # q_h = x @ Wq_h + bq_h   (scale already folded into Wq_h / bq_h)
        q_h = jnp.dot(x, wq_ref[h], preferred_element_type=jnp.float32)
        q_h = q_h + bq_ref[h].astype(jnp.float32)          # (R, E)

        # scores[r, s] = sum_e q_h[r, e] * k_h[s, e]       ('blhe,she->bhls')
        s = jnp.dot(q_h, kT_ref[h].astype(jnp.float32),
                    preferred_element_type=jnp.float32)     # (R, S)

        # numerically-stable softmax over S; divide -> EUP approx reciprocal
        m = jnp.max(s, axis=-1, keepdims=True)
        p = jnp.exp(s - m)
        denom = jnp.sum(p, axis=-1, keepdims=True)
        attn = p * pl.reciprocal(denom, approx=True)        # (R, S)

        # head_out[r, e] = sum_s attn[r, s] * v_h[s, e]     ('bhls,she->blhe')
        ho = jnp.dot(attn.astype(v_ref.dtype), v_ref[h],
                     preferred_element_type=jnp.float32)    # (R, E)

        # fold the head-concat into the output projection:
        #   y += head_out_h @ Wo_h    (lane-dense (R, d_llm) accumulator)
        c = jnp.dot(ho.astype(wo_ref.dtype), wo_ref[h],
                    preferred_element_type=jnp.float32)     # (R, d_llm)
        acc = c if acc is None else acc + c

    y = acc + bo_ref[...].astype(jnp.float32)               # (R, d_llm)
    o_ref[...] = y.astype(o_ref.dtype)


# ---------------------------------------------------------------------------
# Wrapper
# ---------------------------------------------------------------------------

def _round_up(x, m):
    return ((x + m - 1) // m) * m


def _choose_row_tile(n_rows, max_tile=512):
    """Pick (row_tile, padded_rows) for the flattened (B*L) row axis."""
    if n_rows >= 128:
        padded = _round_up(n_rows, 128)
        for t in (max_tile, 256, 128):
            if t <= padded and padded % t == 0:
                return t, padded
        return 128, padded
    padded = _round_up(n_rows, 8)
    return padded, padded


def reprogramming_layer(target_embedding, source_embedding, value_embedding,
                        params, n_heads, *, max_row_tile=512,
                        resident_dtype=None):
    B, L, d_model = target_embedding.shape
    S, d_llm = source_embedding.shape
    dk = params["wq"].shape[0]                    # H * E
    H = n_heads
    assert dk % H == 0
    E = dk // H
    scale = 1.0 / math.sqrt(E)

    # ---- one-time per-call prep in plain XLA (hoisted out of the grid) ----
    # K/V projections depend only on the prototype embeddings.
    k = source_embedding @ params["wk"].T + params["bk"]     # (S, dk)
    v = value_embedding @ params["wv"].T + params["bv"]      # (S, dk)
    kT_h = k.reshape(S, H, E).transpose(1, 2, 0)             # (H, E, S)
    v_h = v.reshape(S, H, E).transpose(1, 0, 2)              # (H, S, E)

    # Weights: transpose to (Din, Dout), split per head, fold 1/sqrt(E) into Wq/bq.
    wq_h = (params["wq"] * scale).T.reshape(d_model, H, E).transpose(1, 0, 2)
    bq_h = (params["bq"] * scale).reshape(H, 1, E)
    wo_h = params["wo"].T.reshape(H, E, d_llm)               # (H, E, d_llm)
    bo2 = params["bo"].reshape(1, d_llm)

    if resident_dtype is not None:   # optional bf16 residents (v6e/v7x MXU path)
        kT_h = kT_h.astype(resident_dtype)
        v_h = v_h.astype(resident_dtype)
        wq_h = wq_h.astype(resident_dtype)
        wo_h = wo_h.astype(resident_dtype)

    # ---- flatten (B, L) -> rows; rows are independent (no masking) ----
    n_rows = B * L
    row_tile, padded = _choose_row_tile(n_rows, max_row_tile)
    x = target_embedding.reshape(n_rows, d_model)
    if padded != n_rows:
        x = jnp.pad(x, ((0, padded - n_rows), (0, 0)))

    kernel = functools.partial(_reprogramming_kernel, n_heads=H)

    out_flat = pl.pallas_call(
        kernel,
        out_shape=jax.ShapeDtypeStruct((padded, d_llm), target_embedding.dtype),
        grid=(padded // row_tile,),
        in_specs=[
            # per-step query-row tile
            pl.BlockSpec((row_tile, d_model), lambda g: (g, 0)),
            # resident (constant block index) operands
            pl.BlockSpec((H, E, S), lambda g: (0, 0, 0)),
            pl.BlockSpec((H, S, E), lambda g: (0, 0, 0)),
            pl.BlockSpec((H, d_model, E), lambda g: (0, 0, 0)),
            pl.BlockSpec((H, 1, E), lambda g: (0, 0, 0)),
            pl.BlockSpec((H, E, d_llm), lambda g: (0, 0, 0)),
            pl.BlockSpec((1, d_llm), lambda g: (0, 0)),
        ],
        out_specs=pl.BlockSpec((row_tile, d_llm), lambda g: (g, 0)),
        compiler_params=pltpu.CompilerParams(
            dimension_semantics=("parallel",),
            vmem_limit_bytes=48 * 1024 * 1024),
    )(x, kT_h, v_h, wq_h, bq_h, wo_h, bo2)

    return out_flat[:n_rows].reshape(B, L, d_llm)


# ---------------------------------------------------------------------------
# Pure-JAX reference (for correctness check)
# ---------------------------------------------------------------------------

def reprogramming_layer_ref(target, source, value, params, n_heads):
    B, L, _ = target.shape
    S, d_llm = source.shape
    H = n_heads
    q = target @ params["wq"].T + params["bq"]
    k = source @ params["wk"].T + params["bk"]
    v = value @ params["wv"].T + params["bv"]
    E = q.shape[-1] // H
    q = q.reshape(B, L, H, E)
    k = k.reshape(S, H, E)
    v = v.reshape(S, H, E)
    scale = 1.0 / math.sqrt(E)
    scores = jnp.einsum("blhe,she->bhls", q, k)
    A = jax.nn.softmax(scale * scores, axis=-1)   # eval-mode dropout = identity
    out = jnp.einsum("bhls,she->blhe", A, v).reshape(B, L, H * E)
    return (out @ params["wo"].T + params["bo"]).reshape(B, L, d_llm)


# ---------------------------------------------------------------------------
# Deterministic parameter init (torch.nn.Linear-like uniform fan-in init)
# ---------------------------------------------------------------------------

def init_params(key, d_model, n_heads, d_llm, d_keys):
    dk = d_keys * n_heads
    ks = jax.random.split(key, 8)

    def lin(kw, kb, d_out, d_in):
        bound = 1.0 / math.sqrt(d_in)
        w = jax.random.uniform(kw, (d_out, d_in), jnp.float32, -bound, bound)
        b = jax.random.uniform(kb, (d_out,), jnp.float32, -bound, bound)
        return w, b

    wq, bq = lin(ks[0], ks[1], dk, d_model)
    wk, bk = lin(ks[2], ks[3], dk, d_llm)
    wv, bv = lin(ks[4], ks[5], dk, d_llm)
    wo, bo = lin(ks[6], ks[7], d_llm, dk)
    return dict(wq=wq, bq=bq, wk=wk, bk=bk, wv=wv, bv=bv, wo=wo, bo=bo)


# ---------------------------------------------------------------------------
# Main
# ---------------------------------------------------------------------------

if __name__ == "__main__":
    # Small, module-consistent shapes.
    B, L, d_model = 2, 8, 32
    n_heads = 4
    d_keys = d_model // n_heads            # 8
    d_llm = 48
    S = 16

    key = jax.random.PRNGKey(0)
    k_param, k_t, k_s, k_v = jax.random.split(key, 4)
    params = init_params(k_param, d_model, n_heads, d_llm, d_keys)

    target = jax.random.normal(k_t, (B, L, d_model), jnp.float32)
    source = jax.random.normal(k_s, (S, d_llm), jnp.float32)
    value = jax.random.normal(k_v, (S, d_llm), jnp.float32)

    out = reprogramming_layer(target, source, value, params, n_heads)
    out = jax.block_until_ready(out)

    ref = reprogramming_layer_ref(target, source, value, params, n_heads)
    assert out.shape == (B, L, d_llm), out.shape
    max_err = float(jnp.max(jnp.abs(out - ref)))
    # approx=True reciprocal (EUP) adds ~1e-4 relative error to the softmax.
    assert jnp.allclose(out, ref, atol=2e-3, rtol=2e-3), max_err

    print("KERNEL_OK")
</pallas_src>

<mosaic_0001>
module attributes {stable_mosaic.version = 11 : i64} {
  func.func @_reprogramming_kernel(%arg0: i32, %arg1: memref<16x32xf32, #tpu.memory_space<vmem>>, %arg2: memref<4x8x16xf32, #tpu.memory_space<vmem>>, %arg3: memref<4x16x8xf32, #tpu.memory_space<vmem>>, %arg4: memref<4x32x8xf32, #tpu.memory_space<vmem>>, %arg5: memref<4x1x8xf32, #tpu.memory_space<vmem>>, %arg6: memref<4x8x48xf32, #tpu.memory_space<vmem>>, %arg7: memref<1x48xf32, #tpu.memory_space<vmem>>, %arg8: memref<16x48xf32, #tpu.memory_space<vmem>>) attributes {dimension_semantics = [#tpu.dimension_semantics<parallel>], iteration_bounds = array<i64: 1>, scalar_prefetch = 0 : i64, scratch_operands = 0 : i64, tpu.core_type = #tpu.core_type<tc>, window_params = [{transform_indices = @transform_0, window_bounds = array<i64: 16, 32>}, {pipeline_mode = #tpu.pipeline_mode<synchronous>, transform_indices = @transform_1, window_bounds = array<i64: 4, 8, 16>}, {pipeline_mode = #tpu.pipeline_mode<synchronous>, transform_indices = @transform_2, window_bounds = array<i64: 4, 16, 8>}, {pipeline_mode = #tpu.pipeline_mode<synchronous>, transform_indices = @transform_3, window_bounds = array<i64: 4, 32, 8>}, {pipeline_mode = #tpu.pipeline_mode<synchronous>, transform_indices = @transform_4, window_bounds = array<i64: 4, 1, 8>}, {pipeline_mode = #tpu.pipeline_mode<synchronous>, transform_indices = @transform_5, window_bounds = array<i64: 4, 8, 48>}, {pipeline_mode = #tpu.pipeline_mode<synchronous>, transform_indices = @transform_6, window_bounds = array<i64: 1, 48>}, {transform_indices = @transform_7, window_bounds = array<i64: 16, 48>}]} {
    %c0 = arith.constant 0 : index
    %c0_0 = arith.constant 0 : index
    %0 = vector.load %arg1[%c0, %c0_0] : memref<16x32xf32, #tpu.memory_space<vmem>>, vector<16x32xf32>
    %c0_1 = arith.constant 0 : index
    %c0_2 = arith.constant 0 : index
    %c0_3 = arith.constant 0 : index
    %1 = vector.load %arg4[%c0_1, %c0_2, %c0_3] : memref<4x32x8xf32, #tpu.memory_space<vmem>>, vector<1x32x8xf32>
    %2 = vector.shape_cast %1 : vector<1x32x8xf32> to vector<32x8xf32>
    %cst = arith.constant dense<0.000000e+00> : vector<16x8xf32>
    %3 = tpu.matmul %0, %2, %cst {dimension_numbers = #tpu.dot_dimension_numbers<[1], [0], [0], [1], [0, 0, 1, 1], [], []>} : vector<16x32xf32>, vector<32x8xf32>, vector<16x8xf32> -> vector<16x8xf32>
    %c0_4 = arith.constant 0 : index
    %c0_5 = arith.constant 0 : index
    %c0_6 = arith.constant 0 : index
    %4 = vector.load %arg5[%c0_4, %c0_5, %c0_6] : memref<4x1x8xf32, #tpu.memory_space<vmem>>, vector<1x1x8xf32>
    %5 = vector.shape_cast %4 : vector<1x1x8xf32> to vector<1x8xf32>
    %6 = vector.broadcast %5 : vector<1x8xf32> to vector<16x8xf32>
    %7 = arith.addf %3, %6 : vector<16x8xf32>
    %c0_7 = arith.constant 0 : index
    %c0_8 = arith.constant 0 : index
    %c0_9 = arith.constant 0 : index
    %8 = vector.load %arg2[%c0_7, %c0_8, %c0_9] : memref<4x8x16xf32, #tpu.memory_space<vmem>>, vector<1x8x16xf32>
    %9 = vector.shape_cast %8 : vector<1x8x16xf32> to vector<8x16xf32>
    %cst_10 = arith.constant dense<0.000000e+00> : vector<16x16xf32>
    %10 = tpu.matmul %7, %9, %cst_10 {dimension_numbers = #tpu.dot_dimension_numbers<[1], [0], [0], [1], [0, 0, 1, 1], [], []>} : vector<16x8xf32>, vector<8x16xf32>, vector<16x16xf32> -> vector<16x16xf32>
    %cst_11 = arith.constant dense<0xFF800000> : vector<16xf32>
    %11 = vector.multi_reduction <maximumf>, %10, %cst_11 [1] : vector<16x16xf32> to vector<16xf32>
    %12 = vector.shape_cast %11 : vector<16xf32> to vector<16x1xf32>
    %13 = vector.broadcast %12 : vector<16x1xf32> to vector<16x16xf32>
    %14 = arith.subf %10, %13 : vector<16x16xf32>
    %15 = math.exp %14 : vector<16x16xf32>
    %cst_12 = arith.constant dense<0.000000e+00> : vector<16xf32>
    %16 = vector.multi_reduction <add>, %15, %cst_12 [1] : vector<16x16xf32> to vector<16xf32>
    %17 = vector.shape_cast %16 : vector<16xf32> to vector<16x1xf32>
    %18 = tpu.reciprocal %17 {approx = true} : vector<16x1xf32> -> vector<16x1xf32>
    %19 = vector.broadcast %18 : vector<16x1xf32> to vector<16x16xf32>
    %20 = arith.mulf %15, %19 : vector<16x16xf32>
    %c0_13 = arith.constant 0 : index
    %c0_14 = arith.constant 0 : index
    %c0_15 = arith.constant 0 : index
    %21 = vector.load %arg3[%c0_13, %c0_14, %c0_15] : memref<4x16x8xf32, #tpu.memory_space<vmem>>, vector<1x16x8xf32>
    %22 = vector.shape_cast %21 : vector<1x16x8xf32> to vector<16x8xf32>
    %cst_16 = arith.constant dense<0.000000e+00> : vector<16x8xf32>
    %23 = tpu.matmul %20, %22, %cst_16 {dimension_numbers = #tpu.dot_dimension_numbers<[1], [0], [0], [1], [0, 0, 1, 1], [], []>} : vector<16x16xf32>, vector<16x8xf32>, vector<16x8xf32> -> vector<16x8xf32>
    %c0_17 = arith.constant 0 : index
    %c0_18 = arith.constant 0 : index
    %c0_19 = arith.constant 0 : index
    %24 = vector.load %arg6[%c0_17, %c0_18, %c0_19] : memref<4x8x48xf32, #tpu.memory_space<vmem>>, vector<1x8x48xf32>
    %25 = vector.shape_cast %24 : vector<1x8x48xf32> to vector<8x48xf32>
    %cst_20 = arith.constant dense<0.000000e+00> : vector<16x48xf32>
    %26 = tpu.matmul %23, %25, %cst_20 {dimension_numbers = #tpu.dot_dimension_numbers<[1], [0], [0], [1], [0, 0, 1, 1], [], []>} : vector<16x8xf32>, vector<8x48xf32>, vector<16x48xf32> -> vector<16x48xf32>
    %c1 = arith.constant 1 : index
    %c0_21 = arith.constant 0 : index
    %c0_22 = arith.constant 0 : index
    %27 = vector.load %arg4[%c1, %c0_21, %c0_22] : memref<4x32x8xf32, #tpu.memory_space<vmem>>, vector<1x32x8xf32>
    %28 = vector.shape_cast %27 : vector<1x32x8xf32> to vector<32x8xf32>
    %cst_23 = arith.constant dense<0.000000e+00> : vector<16x8xf32>
    %29 = tpu.matmul %0, %28, %cst_23 {dimension_numbers = #tpu.dot_dimension_numbers<[1], [0], [0], [1], [0, 0, 1, 1], [], []>} : vector<16x32xf32>, vector<32x8xf32>, vector<16x8xf32> -> vector<16x8xf32>
    %c1_24 = arith.constant 1 : index
    %c0_25 = arith.constant 0 : index
    %c0_26 = arith.constant 0 : index
    %30 = vector.load %arg5[%c1_24, %c0_25, %c0_26] : memref<4x1x8xf32, #tpu.memory_space<vmem>>, vector<1x1x8xf32>
    %31 = vector.shape_cast %30 : vector<1x1x8xf32> to vector<1x8xf32>
    %32 = vector.broadcast %31 : vector<1x8xf32> to vector<16x8xf32>
    %33 = arith.addf %29, %32 : vector<16x8xf32>
    %c1_27 = arith.constant 1 : index
    %c0_28 = arith.constant 0 : index
    %c0_29 = arith.constant 0 : index
    %34 = vector.load %arg2[%c1_27, %c0_28, %c0_29] : memref<4x8x16xf32, #tpu.memory_space<vmem>>, vector<1x8x16xf32>
    %35 = vector.shape_cast %34 : vector<1x8x16xf32> to vector<8x16xf32>
    %cst_30 = arith.constant dense<0.000000e+00> : vector<16x16xf32>
    %36 = tpu.matmul %33, %35, %cst_30 {dimension_numbers = #tpu.dot_dimension_numbers<[1], [0], [0], [1], [0, 0, 1, 1], [], []>} : vector<16x8xf32>, vector<8x16xf32>, vector<16x16xf32> -> vector<16x16xf32>
    %cst_31 = arith.constant dense<0xFF800000> : vector<16xf32>
    %37 = vector.multi_reduction <maximumf>, %36, %cst_31 [1] : vector<16x16xf32> to vector<16xf32>
    %38 = vector.shape_cast %37 : vector<16xf32> to vector<16x1xf32>
    %39 = vector.broadcast %38 : vector<16x1xf32> to vector<16x16xf32>
    %40 = arith.subf %36, %39 : vector<16x16xf32>
    %41 = math.exp %40 : vector<16x16xf32>
    %cst_32 = arith.constant dense<0.000000e+00> : vector<16xf32>
    %42 = vector.multi_reduction <add>, %41, %cst_32 [1] : vector<16x16xf32> to vector<16xf32>
    %43 = vector.shape_cast %42 : vector<16xf32> to vector<16x1xf32>
    %44 = tpu.reciprocal %43 {approx = true} : vector<16x1xf32> -> vector<16x1xf32>
    %45 = vector.broadcast %44 : vector<16x1xf32> to vector<16x16xf32>
    %46 = arith.mulf %41, %45 : vector<16x16xf32>
    %c1_33 = arith.constant 1 : index
    %c0_34 = arith.constant 0 : index
    %c0_35 = arith.constant 0 : index
    %47 = vector.load %arg3[%c1_33, %c0_34, %c0_35] : memref<4x16x8xf32, #tpu.memory_space<vmem>>, vector<1x16x8xf32>
    %48 = vector.shape_cast %47 : vector<1x16x8xf32> to vector<16x8xf32>
    %cst_36 = arith.constant dense<0.000000e+00> : vector<16x8xf32>
    %49 = tpu.matmul %46, %48, %cst_36 {dimension_numbers = #tpu.dot_dimension_numbers<[1], [0], [0], [1], [0, 0, 1, 1], [], []>} : vector<16x16xf32>, vector<16x8xf32>, vector<16x8xf32> -> vector<16x8xf32>
    %c1_37 = arith.constant 1 : index
    %c0_38 = arith.constant 0 : index
    %c0_39 = arith.constant 0 : index
    %50 = vector.load %arg6[%c1_37, %c0_38, %c0_39] : memref<4x8x48xf32, #tpu.memory_space<vmem>>, vector<1x8x48xf32>
    %51 = vector.shape_cast %50 : vector<1x8x48xf32> to vector<8x48xf32>
    %cst_40 = arith.constant dense<0.000000e+00> : vector<16x48xf32>
    %52 = tpu.matmul %49, %51, %cst_40 {dimension_numbers = #tpu.dot_dimension_numbers<[1], [0], [0], [1], [0, 0, 1, 1], [], []>} : vector<16x8xf32>, vector<8x48xf32>, vector<16x48xf32> -> vector<16x48xf32>
    %53 = arith.addf %26, %52 : vector<16x48xf32>
    %c2 = arith.constant 2 : index
    %c0_41 = arith.constant 0 : index
    %c0_42 = arith.constant 0 : index
    %54 = vector.load %arg4[%c2, %c0_41, %c0_42] : memref<4x32x8xf32, #tpu.memory_space<vmem>>, vector<1x32x8xf32>
    %55 = vector.shape_cast %54 : vector<1x32x8xf32> to vector<32x8xf32>
    %cst_43 = arith.constant dense<0.000000e+00> : vector<16x8xf32>
    %56 = tpu.matmul %0, %55, %cst_43 {dimension_numbers = #tpu.dot_dimension_numbers<[1], [0], [0], [1], [0, 0, 1, 1], [], []>} : vector<16x32xf32>, vector<32x8xf32>, vector<16x8xf32> -> vector<16x8xf32>
    %c2_44 = arith.constant 2 : index
    %c0_45 = arith.constant 0 : index
    %c0_46 = arith.constant 0 : index
    %57 = vector.load %arg5[%c2_44, %c0_45, %c0_46] : memref<4x1x8xf32, #tpu.memory_space<vmem>>, vector<1x1x8xf32>
    %58 = vector.shape_cast %57 : vector<1x1x8xf32> to vector<1x8xf32>
    %59 = vector.broadcast %58 : vector<1x8xf32> to vector<16x8xf32>
    %60 = arith.addf %56, %59 : vector<16x8xf32>
    %c2_47 = arith.constant 2 : index
    %c0_48 = arith.constant 0 : index
    %c0_49 = arith.constant 0 : index
    %61 = vector.load %arg2[%c2_47, %c0_48, %c0_49] : memref<4x8x16xf32, #tpu.memory_space<vmem>>, vector<1x8x16xf32>
    %62 = vector.shape_cast %61 : vector<1x8x16xf32> to vector<8x16xf32>
    %cst_50 = arith.constant dense<0.000000e+00> : vector<16x16xf32>
    %63 = tpu.matmul %60, %62, %cst_50 {dimension_numbers = #tpu.dot_dimension_numbers<[1], [0], [0], [1], [0, 0, 1, 1], [], []>} : vector<16x8xf32>, vector<8x16xf32>, vector<16x16xf32> -> vector<16x16xf32>
    %cst_51 = arith.constant dense<0xFF800000> : vector<16xf32>
    %64 = vector.multi_reduction <maximumf>, %63, %cst_51 [1] : vector<16x16xf32> to vector<16xf32>
    %65 = vector.shape_cast %64 : vector<16xf32> to vector<16x1xf32>
    %66 = vector.broadcast %65 : vector<16x1xf32> to vector<16x16xf32>
    %67 = arith.subf %63, %66 : vector<16x16xf32>
    %68 = math.exp %67 : vector<16x16xf32>
    %cst_52 = arith.constant dense<0.000000e+00> : vector<16xf32>
    %69 = vector.multi_reduction <add>, %68, %cst_52 [1] : vector<16x16xf32> to vector<16xf32>
    %70 = vector.shape_cast %69 : vector<16xf32> to vector<16x1xf32>
    %71 = tpu.reciprocal %70 {approx = true} : vector<16x1xf32> -> vector<16x1xf32>
    %72 = vector.broadcast %71 : vector<16x1xf32> to vector<16x16xf32>
    %73 = arith.mulf %68, %72 : vector<16x16xf32>
    %c2_53 = arith.constant 2 : index
    %c0_54 = arith.constant 0 : index
    %c0_55 = arith.constant 0 : index
    %74 = vector.load %arg3[%c2_53, %c0_54, %c0_55] : memref<4x16x8xf32, #tpu.memory_space<vmem>>, vector<1x16x8xf32>
    %75 = vector.shape_cast %74 : vector<1x16x8xf32> to vector<16x8xf32>
    %cst_56 = arith.constant dense<0.000000e+00> : vector<16x8xf32>
    %76 = tpu.matmul %73, %75, %cst_56 {dimension_numbers = #tpu.dot_dimension_numbers<[1], [0], [0], [1], [0, 0, 1, 1], [], []>} : vector<16x16xf32>, vector<16x8xf32>, vector<16x8xf32> -> vector<16x8xf32>
    %c2_57 = arith.constant 2 : index
    %c0_58 = arith.constant 0 : index
    %c0_59 = arith.constant 0 : index
    %77 = vector.load %arg6[%c2_57, %c0_58, %c0_59] : memref<4x8x48xf32, #tpu.memory_space<vmem>>, vector<1x8x48xf32>
    %78 = vector.shape_cast %77 : vector<1x8x48xf32> to vector<8x48xf32>
    %cst_60 = arith.constant dense<0.000000e+00> : vector<16x48xf32>
    %79 = tpu.matmul %76, %78, %cst_60 {dimension_numbers = #tpu.dot_dimension_numbers<[1], [0], [0], [1], [0, 0, 1, 1], [], []>} : vector<16x8xf32>, vector<8x48xf32>, vector<16x48xf32> -> vector<16x48xf32>
    %80 = arith.addf %53, %79 : vector<16x48xf32>
    %c3 = arith.constant 3 : index
    %c0_61 = arith.constant 0 : index
    %c0_62 = arith.constant 0 : index
    %81 = vector.load %arg4[%c3, %c0_61, %c0_62] : memref<4x32x8xf32, #tpu.memory_space<vmem>>, vector<1x32x8xf32>
    %82 = vector.shape_cast %81 : vector<1x32x8xf32> to vector<32x8xf32>
    %cst_63 = arith.constant dense<0.000000e+00> : vector<16x8xf32>
    %83 = tpu.matmul %0, %82, %cst_63 {dimension_numbers = #tpu.dot_dimension_numbers<[1], [0], [0], [1], [0, 0, 1, 1], [], []>} : vector<16x32xf32>, vector<32x8xf32>, vector<16x8xf32> -> vector<16x8xf32>
    %c3_64 = arith.constant 3 : index
    %c0_65 = arith.constant 0 : index
    %c0_66 = arith.constant 0 : index
    %84 = vector.load %arg5[%c3_64, %c0_65, %c0_66] : memref<4x1x8xf32, #tpu.memory_space<vmem>>, vector<1x1x8xf32>
    %85 = vector.shape_cast %84 : vector<1x1x8xf32> to vector<1x8xf32>
    %86 = vector.broadcast %85 : vector<1x8xf32> to vector<16x8xf32>
    %87 = arith.addf %83, %86 : vector<16x8xf32>
    %c3_67 = arith.constant 3 : index
    %c0_68 = arith.constant 0 : index
    %c0_69 = arith.constant 0 : index
    %88 = vector.load %arg2[%c3_67, %c0_68, %c0_69] : memref<4x8x16xf32, #tpu.memory_space<vmem>>, vector<1x8x16xf32>
    %89 = vector.shape_cast %88 : vector<1x8x16xf32> to vector<8x16xf32>
    %cst_70 = arith.constant dense<0.000000e+00> : vector<16x16xf32>
    %90 = tpu.matmul %87, %89, %cst_70 {dimension_numbers = #tpu.dot_dimension_numbers<[1], [0], [0], [1], [0, 0, 1, 1], [], []>} : vector<16x8xf32>, vector<8x16xf32>, vector<16x16xf32> -> vector<16x16xf32>
    %cst_71 = arith.constant dense<0xFF800000> : vector<16xf32>
    %91 = vector.multi_reduction <maximumf>, %90, %cst_71 [1] : vector<16x16xf32> to vector<16xf32>
    %92 = vector.shape_cast %91 : vector<16xf32> to vector<16x1xf32>
    %93 = vector.broadcast %92 : vector<16x1xf32> to vector<16x16xf32>
    %94 = arith.subf %90, %93 : vector<16x16xf32>
    %95 = math.exp %94 : vector<16x16xf32>
    %cst_72 = arith.constant dense<0.000000e+00> : vector<16xf32>
    %96 = vector.multi_reduction <add>, %95, %cst_72 [1] : vector<16x16xf32> to vector<16xf32>
    %97 = vector.shape_cast %96 : vector<16xf32> to vector<16x1xf32>
    %98 = tpu.reciprocal %97 {approx = true} : vector<16x1xf32> -> vector<16x1xf32>
    %99 = vector.broadcast %98 : vector<16x1xf32> to vector<16x16xf32>
    %100 = arith.mulf %95, %99 : vector<16x16xf32>
    %c3_73 = arith.constant 3 : index
    %c0_74 = arith.constant 0 : index
    %c0_75 = arith.constant 0 : index
    %101 = vector.load %arg3[%c3_73, %c0_74, %c0_75] : memref<4x16x8xf32, #tpu.memory_space<vmem>>, vector<1x16x8xf32>
    %102 = vector.shape_cast %101 : vector<1x16x8xf32> to vector<16x8xf32>
    %cst_76 = arith.constant dense<0.000000e+00> : vector<16x8xf32>
    %103 = tpu.matmul %100, %102, %cst_76 {dimension_numbers = #tpu.dot_dimension_numbers<[1], [0], [0], [1], [0, 0, 1, 1], [], []>} : vector<16x16xf32>, vector<16x8xf32>, vector<16x8xf32> -> vector<16x8xf32>
    %c3_77 = arith.constant 3 : index
    %c0_78 = arith.constant 0 : index
    %c0_79 = arith.constant 0 : index
    %104 = vector.load %arg6[%c3_77, %c0_78, %c0_79] : memref<4x8x48xf32, #tpu.memory_space<vmem>>, vector<1x8x48xf32>
    %105 = vector.shape_cast %104 : vector<1x8x48xf32> to vector<8x48xf32>
    %cst_80 = arith.constant dense<0.000000e+00> : vector<16x48xf32>
    %106 = tpu.matmul %103, %105, %cst_80 {dimension_numbers = #tpu.dot_dimension_numbers<[1], [0], [0], [1], [0, 0, 1, 1], [], []>} : vector<16x8xf32>, vector<8x48xf32>, vector<16x48xf32> -> vector<16x48xf32>
    %107 = arith.addf %80, %106 : vector<16x48xf32>
    %c0_81 = arith.constant 0 : index
    %c0_82 = arith.constant 0 : index
    %108 = vector.load %arg7[%c0_81, %c0_82] : memref<1x48xf32, #tpu.memory_space<vmem>>, vector<1x48xf32>
    %109 = vector.broadcast %108 : vector<1x48xf32> to vector<16x48xf32>
    %110 = arith.addf %107, %109 : vector<16x48xf32>
    %c0_83 = arith.constant 0 : index
    %c0_84 = arith.constant 0 : index
    %111 = vector.load %arg8[%c0_83, %c0_84] : memref<16x48xf32, #tpu.memory_space<vmem>>, vector<16x48xf32>
    tpu.vector_store %arg8[%c0_83, %c0_84], %110 {strides = array<i32>} : memref<16x48xf32, #tpu.memory_space<vmem>>, vector<16x48xf32>,
    return
  }
  func.func @transform_0(%arg0: i32) -> (i32, i32) {
    %c0_i32 = arith.constant 0 : i32
    %c0_i32_0 = arith.constant 0 : i32
    return %arg0, %c0_i32 : i32, i32
  }
  func.func @transform_1(%arg0: i32) -> (i32, i32, i32) {
    %c0_i32 = arith.constant 0 : i32
    %c0_i32_0 = arith.constant 0 : i32
    %c0_i32_1 = arith.constant 0 : i32
    %c0_i32_2 = arith.constant 0 : i32
    return %c0_i32, %c0_i32_0, %c0_i32_1 : i32, i32, i32
  }
  func.func @transform_2(%arg0: i32) -> (i32, i32, i32) {
    %c0_i32 = arith.constant 0 : i32
    %c0_i32_0 = arith.constant 0 : i32
    %c0_i32_1 = arith.constant 0 : i32
    %c0_i32_2 = arith.constant 0 : i32
    return %c0_i32, %c0_i32_0, %c0_i32_1 : i32, i32, i32
  }
  func.func @transform_3(%arg0: i32) -> (i32, i32, i32) {
    %c0_i32 = arith.constant 0 : i32
    %c0_i32_0 = arith.constant 0 : i32
    %c0_i32_1 = arith.constant 0 : i32
    %c0_i32_2 = arith.constant 0 : i32
    return %c0_i32, %c0_i32_0, %c0_i32_1 : i32, i32, i32
  }
  func.func @transform_4(%arg0: i32) -> (i32, i32, i32) {
    %c0_i32 = arith.constant 0 : i32
    %c0_i32_0 = arith.constant 0 : i32
    %c0_i32_1 = arith.constant 0 : i32
    %c0_i32_2 = arith.constant 0 : i32
    return %c0_i32, %c0_i32_0, %c0_i32_1 : i32, i32, i32
  }
  func.func @transform_5(%arg0: i32) -> (i32, i32, i32) {
    %c0_i32 = arith.constant 0 : i32
    %c0_i32_0 = arith.constant 0 : i32
    %c0_i32_1 = arith.constant 0 : i32
    %c0_i32_2 = arith.constant 0 : i32
    return %c0_i32, %c0_i32_0, %c0_i32_1 : i32, i32, i32
  }
  func.func @transform_6(%arg0: i32) -> (i32, i32) {
    %c0_i32 = arith.constant 0 : i32
    %c0_i32_0 = arith.constant 0 : i32
    %c0_i32_1 = arith.constant 0 : i32
    return %c0_i32, %c0_i32_0 : i32, i32
  }
  func.func @transform_7(%arg0: i32) -> (i32, i32) {
    %c0_i32 = arith.constant 0 : i32
    %c0_i32_0 = arith.constant 0 : i32
    return %arg0, %c0_i32 : i32, i32
  }
}

</mosaic_0001>

<bundles_post_ra>
// kernel: tpu_custom_call.1
= control target key start
LH: loop header
LB: loop body
LE: loop exit
PB: predicated region body
PF: predicated region fallthrough
CT: control target
= control target key end

     0   :  { %vm40_vm0 = vcmask 261120   ;;  %s2037_s0 = inlined_call_operand.vmem [shape: f32[16,32], index: 0, kind: input, shape index: {}]   ;;  %s2038_s1 = inlined_call_operand.vmem [shape: f32[4,8,16], index: 1, kind: input, shape index: {}]   ;;  %s2039_s2 = inlined_call_operand.vmem [shape: f32[4,16,8], index: 2, kind: input, shape index: {}]   ;;  %s2040_s3 = inlined_call_operand.vmem [shape: f32[4,32,8], index: 3, kind: input, shape index: {}]   ;;  %s2041_s4 = inlined_call_operand.vmem [shape: f32[4,1,8], index: 4, kind: input, shape index: {}]   ;;  %s2042_s5 = inlined_call_operand.vmem [shape: f32[4,8,48], index: 5, kind: input, shape index: {}]   ;;  %s2043_s6 = inlined_call_operand.vmem [shape: f32[1,48], index: 6, kind: input, shape index: {}]   ;;  %s2044_s7 = inlined_call_operand.hbm [shape: f32[16,48], index: 7, kind: output, shape index: {}]  }
   0x1   :  { %v32_v0 = vld [vmem:[%s2040_s3 + $0x18] sm:$0xff]  ;;  %v31_v1 = vld [vmem:[%s2040_s3 + $0x10] sm:$0xff]  ;;  %v1854_v2 = vld [vmem:[%s2037_s0] sm:$0xff] }
   0x2   :  { %1633 = vmatprep.subr.mxu0 %v32_v0  ;;  %v30_v3 = vld [vmem:[%s2040_s3 + $0x8] sm:$0xff]  ;;  %1641 = vmatprep.mubr.msk.f32.mxu0 %vm40_vm0, %v1854_v2 }
   0x3   :  { %1634 = vmatpush3.msra.mxu0 %v32_v0 }
   0x4   :  { %12 = vsyncpa [#allocation3], 0  ;;  %1635 = vmatprep.subr.mxu0 %v31_v1  ;;  %v29_v4 = vld [vmem:[%s2040_s3] sm:$0xff]  ;;  %v1867_v5 = vld [vmem:[%s2037_s0 + $0x8] sm:$0xff]  ;;  %vm123_vm1 = vcmask 64512   ;;  %vm205_vm2 = vcmask 130048  }
   0x5   :  { %1636 = vmatpush3.msra.mxu0 %v31_v1  ;;  %v122_v6 = vld [vmem:[%s2038_s1] sm:$0xff]  ;;  %v229_v26 = vld [vmem:[%s2039_s2 + $0x8] sm:$0xff]  ;;  %v1515_v28 = vld [vmem:[%s2040_s3 + $0x38] sm:$0xff]  ;;  %s1802_s25 = smov [#allocation2]   ;;  %vm1486_vm3 = vcmask 392192  }
   0x6   :  { %1637 = vmatprep.subr.mxu0 %v30_v3  ;;  %1644 = vmatprep.subr.mxu1 %v122_v6  ;;  %v1505_v8 = vld [vmem:[%s2041_s4] ss:$0 sm:$0xff]  ;;  %v1514_v35 = vld [vmem:[%s2040_s3 + $0x30] sm:$0xff]  ;;  %v1513_v36 = vld [vmem:[%s2040_s3 + $0x28] sm:$0xff]  ;;  %s1494_s26 = sshll.u32 %s1802_s25, 4  ;;  %s1495_s26 = int_to_ptr.vmem [resolvable:$true] %s1494_s26 }
   0x7   :  { %1638 = vmatpush3.msra.mxu0 %v30_v3  ;;  %1645 = vmatpush3.msra.mxu1 %v122_v6  ;;  %v228_v27 = vld [vmem:[%s2039_s2] sm:$0xff]  ;;  %v1520_v38 = vld [vmem:[%s2038_s1 + $0x8] sm:$0xff]  ;;  %v1524_v60 = vld [vmem:[%s2039_s2 + $0x18] sm:$0xff]  ;;  %s1780_s27 = scalar_lea.vmem %s1495_s26, 256  ;;  %p1785_p1 = scmp.lt.s32.totalorder %s1495_s26, %s1495_s26 }
   0x8   :  { %1639 = vmatprep.subr.mxu0 %v29_v4  ;;  %1649 = vmatprep.subr.mxu1 %v229_v26  ;;  %v1512_v37 = vld [vmem:[%s2040_s3 + $0x20] sm:$0xff]  ;;  %v1523_v61 = vld [vmem:[%s2039_s2 + $0x10] sm:$0xff]  ;;  %v1527_v63 = vld [vmem:[%s2042_s5 + $0x8] sm:$0xff]  ;;  %p1781_p0 = scmp.ne.s32.totalorder %s1495_s26, %s1780_s27  ;;  %p1786_p2 = scmp.lt.s32.totalorder %s1780_s27, %s1780_s27 }
   0x9   :  { %1640 = vmatpush3.msra.mxu0 %v29_v4  ;;  %v1517_v42 = vld [vmem:[%s2041_s4 + $0x1] ss:$0 sm:$0xff] }
   0xa   :  { %1642 = vmatmul.mubr.msk.f32.vlgmr.msra.gmra.mxu0 %vm40_vm0, %v1867_v5  ;;  %1667 = vmatprep.subr.mxu0 %v1520_v38  ;;  %v311_v62 = vld [vmem:[%s2042_s5] sm:$0xff]  ;;  %p1787_p3 = por %p1786_p2, %p1785_p1 }
   0xb   :  { %1668 = vmatpush3.msra.mxu0 %v1520_v38  ;;  %v1544_v38 = vld [vmem:[%s2039_s2 + $0x28] sm:$0xff] }
   0xc   :  { %1672 = vmatprep.subr.mxu0 %v1524_v60  ;;  %p1788_p4 = pnand %p1787_p3, %p1781_p0 }
  0xca   :  { %v1643_v7 = vpop.f32.mrf.mxu0 }
  0xcb   :  { %v119_v11 = vadd.f32 %v1643_v7, %v1505_v8 }
  0xcc   :  { %v113_v9 = vpop.f32.mrf.mxu0 }
  0xcd   :  { %v114_v10 = vadd.f32 %v1505_v8, %v113_v9  ;;  %v1535_v8 = vld [vmem:[%s2040_s3 + $0x58] sm:$0xff] }
  0xcf   :  { %1646 = vmatprep.mubr.msk.f32.mxu1 %vm123_vm1, %v114_v10 }
  0xd0   :  { %1647 = vmatmul.mubr.msk.f32.vlgmr.msra.gmra.mxu1 %vm123_vm1, %v119_v11  ;;  %v1534_v11 = vld [vmem:[%s2040_s3 + $0x50] sm:$0xff] }
  0xd1   :  { %1650 = vmatpush3.msra.mxu1 %v229_v26 }
  0xd2   :  { %1651 = vmatprep.subr.mxu1 %v228_v27 }
  0xd3   :  { %1652 = vmatpush3.msra.mxu1 %v228_v27 }
  0xd4   :  { %1656 = vmatprep.subr.mxu1 %v1515_v28 }
 0x190   :  { %v1648_v12 = vpop.f32.mrf.mxu1 }
 0x191   :  { %v209_v15 = vsel %vm205_vm2, %v1648_v12, -inf }
 0x192   :  { %v196_v13 = vpop.f32.mrf.mxu1 }
 0x193   :  { %v206_v14 = vsel %vm205_vm2, %v196_v13, -inf }
 0x194   :  { %207 = vmax.xlane.f32.xlu0 %v206_v14  ;;  %v1540_v14 = vld [vmem:[%s2038_s1 + $0x10] sm:$0xff] }
 0x198   :  { %210 = vmax.xlane.f32.xlu0 %v209_v15 }
 0x21d   :  { %v208_v16 = vpop.xlane.xlu0 %207 }
 0x21e   :  { %v212_v17 = vsub.f32 %v196_v13, %v208_v16  ;;  %v1532_v13 = vld [vmem:[%s2040_s3 + $0x40] sm:$0xff] }
 0x220   :  { %v214_v18 = vmul.f32 1.442695, %v212_v17 }
 0x221   :  { %v211_v19 = vpop.xlane.xlu0 %210 }
 0x222   :  { %1748 = vpow2.f32 %v214_v18  ;;  %v213_v20 = vsub.f32 %v1648_v12, %v211_v19  ;;  %v1533_v12 = vld [vmem:[%s2040_s3 + $0x48] sm:$0xff]  ;;  %v1537_v18 = vld [vmem:[%s2041_s4 + $0x2] ss:$0 sm:$0xff] }
 0x224   :  { %v216_v21 = vmul.f32 1.442695, %v213_v20 }
 0x226   :  { %1750 = vpow2.f32 %v216_v21 }
 0x22f   :  { %v1749_v22 = vpop.eup %1748 }
 0x230   :  { %v218_v23 = vsel %vm205_vm2, %v1749_v22, 0.0 }
 0x231   :  { %219 = vadd.xlane.f32.xlu1 %v218_v23 }
 0x233   :  { %v1751_v24 = vpop.eup %1750 }
 0x234   :  { %v221_v25 = vsel %vm205_vm2, %v1751_v24, 0.0 }
 0x235   :  { %222 = vadd.xlane.f32.xlu1 %v221_v25 }
 0x2ba   :  { %v220_v29 = vpop.xlane.xlu1 %219 }
 0x2bb   :  { %1752 = vrcp.f32 %v220_v29 }
 0x2be   :  { %v223_v30 = vpop.xlane.xlu1 %222 }
 0x2bf   :  { %1754 = vrcp.f32 %v223_v30 }
 0x2c8   :  { %v1753_v31 = vpop.eup %1752 }
 0x2c9   :  { %v226_v32 = vmul.f32 %v1753_v31, %v1749_v22 }
 0x2cb   :  { %1653 = vmatprep.mubr.msk.f32.mxu1 %vm205_vm2, %v226_v32 }
 0x2cc   :  { %v1755_v33 = vpop.eup %1754 }
 0x2cd   :  { %v227_v34 = vmul.f32 %v1755_v33, %v1751_v24 }
 0x2cf   :  { %1654 = vmatmul.mubr.msk.f32.vlgmr.msra.gmra.mxu1 %vm205_vm2, %v227_v34 }
 0x2d0   :  { %1657 = vmatpush3.msra.mxu1 %v1515_v28  ;;  %1664 = vmatprep.mubr.msk.f32.mxu1 %vm40_vm0, %v1854_v2 }
 0x2d1   :  { %1658 = vmatprep.subr.mxu1 %v1514_v35 }
 0x2d2   :  { %1659 = vmatpush3.msra.mxu1 %v1514_v35 }
 0x2d3   :  { %1660 = vmatprep.subr.mxu1 %v1513_v36 }
 0x2d4   :  { %1661 = vmatpush3.msra.mxu1 %v1513_v36 }
 0x2d5   :  { %1662 = vmatprep.subr.mxu1 %v1512_v37 }
 0x2d6   :  { %1663 = vmatpush3.msra.mxu1 %v1512_v37 }
 0x2d7   :  { %1665 = vmatmul.mubr.msk.f32.vlgmr.msra.gmra.mxu1 %vm40_vm0, %v1867_v5  ;;  %1679 = vmatprep.subr.mxu1 %v1527_v63 }
 0x2d8   :  { %1680 = vmatpush3.msra.mxu1 %v1527_v63 }
 0x2d9   :  { %1689 = vmatprep.subr.mxu1 %v1535_v8 }
 0x38f   :  { %v1655_v39 = vpop.f32.mrf.mxu1 }
 0x391   :  { %v302_v40 = vpop.f32.mrf.mxu1 }
 0x397   :  { %v1666_v41 = vpop.f32.mrf.mxu1 }
 0x398   :  { %v397_v45 = vadd.f32 %v1666_v41, %v1517_v42 }
 0x399   :  { %v391_v43 = vpop.f32.mrf.mxu1 }
 0x39a   :  { %v392_v44 = vadd.f32 %v1517_v42, %v391_v43 }
 0x39c   :  { %1669 = vmatprep.mubr.msk.f32.mxu0 %vm123_vm1, %v392_v44 }
 0x39d   :  { %1670 = vmatmul.mubr.msk.f32.vlgmr.msra.gmra.mxu0 %vm123_vm1, %v397_v45 }
 0x39e   :  { %1673 = vmatpush3.msra.mxu0 %v1524_v60 }
 0x39f   :  { %1674 = vmatprep.subr.mxu0 %v1523_v61 }
 0x3a0   :  { %1675 = vmatpush3.msra.mxu0 %v1523_v61 }
 0x3a1   :  { %1684 = vmatprep.subr.mxu0 %v311_v62 }
 0x45d   :  { %v1671_v46 = vpop.f32.mrf.mxu0 }
 0x45e   :  { %v486_v47 = vsel %vm205_vm2, %v1671_v46, -inf }
 0x45f   :  { %487 = vmax.xlane.f32.xlu1 %v486_v47  ;;  %v474_v48 = vpop.f32.mrf.mxu0  ;;  %v1552_v47 = vld [vmem:[%s2040_s3 + $0x70] sm:$0xff] }
 0x460   :  { %v483_v49 = vsel %vm205_vm2, %v474_v48, -inf }
 0x461   :  { %484 = vmax.xlane.f32.xlu0 %v483_v49  ;;  %v1550_v49 = vld [vmem:[%s2040_s3 + $0x60] sm:$0xff] }
 0x4e8   :  { %v488_v50 = vpop.xlane.xlu1 %487 }
 0x4e9   :  { %v490_v51 = vsub.f32 %v1671_v46, %v488_v50  ;;  %v1547_v50 = vld [vmem:[%s2042_s5 + $0x10] sm:$0xff] }
 0x4ea   :  { %v485_v52 = vpop.xlane.xlu0 %484 }
 0x4eb   :  { %v493_v53 = vmul.f32 1.442695, %v490_v51  ;;  %v489_v54 = vsub.f32 %v474_v48, %v485_v52  ;;  %v1551_v48 = vld [vmem:[%s2040_s3 + $0x68] sm:$0xff] }
 0x4ed   :  { %1756 = vpow2.f32 %v493_v53  ;;  %v491_v55 = vmul.f32 1.442695, %v489_v54 }
 0x4ef   :  { %1758 = vpow2.f32 %v491_v55 }
 0x4fa   :  { %v1757_v56 = vpop.eup %1756 }
 0x4fb   :  { %v498_v57 = vsel %vm205_vm2, %v1757_v56, 0.0 }
 0x4fc   :  { %v1759_v58 = vpop.eup %1758  ;;  %499 = vadd.xlane.f32.xlu1 %v498_v57 }
 0x4fd   :  { %v495_v59 = vsel %vm205_vm2, %v1759_v58, 0.0 }
 0x4fe   :  { %496 = vadd.xlane.f32.xlu0 %v495_v59 }
 0x585   :  { %v500_v0 = vpop.xlane.xlu1 %499 }
 0x586   :  { %1760 = vrcp.f32 %v500_v0 }
 0x587   :  { %v497_v1 = vpop.xlane.xlu0 %496 }
 0x588   :  { %1762 = vrcp.f32 %v497_v1 }
 0x593   :  { %v1761_v3 = vpop.eup %1760 }
 0x594   :  { %v504_v7 = vmul.f32 %v1761_v3, %v1757_v56 }
 0x595   :  { %v1763_v4 = vpop.eup %1762 }
 0x596   :  { %v503_v6 = vmul.f32 %v1763_v4, %v1759_v58 }
 0x598   :  { %1676 = vmatprep.mubr.msk.f32.mxu0 %vm205_vm2, %v503_v6 }
 0x599   :  { %1677 = vmatmul.mubr.msk.f32.vlgmr.msra.gmra.mxu0 %vm205_vm2, %v504_v7 }
 0x59a   :  { %1686 = vmatprep.mubr.msk.f32.mxu0 %vm123_vm1, %v302_v40  ;;  %1685 = vmatpush3.msra.mxu0 %v311_v62  ;;  %v1553_v40 = vld [vmem:[%s2040_s3 + $0x78] sm:$0xff] }
 0x59b   :  { %1700 = vmatprep.subr.mxu0 %v1540_v14 }
 0x59d   :  { %1687 = vmatmul.mubr.msk.f32.vlgmr.msra.gmra.mxu0 %vm123_vm1, %v1655_v39  ;;  %v1543_v39 = vld [vmem:[%s2039_s2 + $0x20] sm:$0xff] }
 0x59e   :  { %1701 = vmatpush3.msra.mxu0 %v1540_v14 }
 0x59f   :  { %1705 = vmatprep.subr.mxu0 %v1544_v38 }
 0x659   :  { %v1678_v9 = vpop.f32.mrf.mxu0 }
 0x65b   :  { %v580_v10 = vpop.f32.mrf.mxu0 }
 0x65c   :  { %1681 = vmatprep.mubr.msk.f32.mxu1 %vm123_vm1, %v580_v10 }
 0x65d   :  { %1682 = vmatmul.mubr.msk.f32.vlgmr.msra.gmra.mxu1 %vm123_vm1, %v1678_v9  ;;  %v1965_v22 = vpop.f32.mrf.mxu0 }
 0x65e   :  { %1690 = vmatpush3.msra.mxu1 %v1535_v8  ;;  %1697 = vmatprep.mubr.msk.f32.mxu1 %vm40_vm0, %v1854_v2 }
 0x65f   :  { %1691 = vmatprep.subr.mxu1 %v1534_v11  ;;  %v1967_v23 = vpop.f32.mrf.mxu0 }
 0x660   :  { %1692 = vmatpush3.msra.mxu1 %v1534_v11 }
 0x661   :  { %1693 = vmatprep.subr.mxu1 %v1533_v12 }
 0x662   :  { %1694 = vmatpush3.msra.mxu1 %v1533_v12 }
 0x663   :  { %1695 = vmatprep.subr.mxu1 %v1532_v13 }
 0x664   :  { %1696 = vmatpush3.msra.mxu1 %v1532_v13 }
 0x665   :  { %1698 = vmatmul.mubr.msk.f32.vlgmr.msra.gmra.mxu1 %vm40_vm0, %v1867_v5  ;;  %1712 = vmatprep.subr.mxu1 %v1547_v50 }
 0x666   :  { %1713 = vmatpush3.msra.mxu1 %v1547_v50 }
 0x71d   :  { %v1956_v15 = vpop.f32.mrf.mxu1 }
 0x71e   :  { %v750_v57 = vadd.f32 %v1965_v22, %v1956_v15  ;;  %v1562_v15 = vld [vmem:[%s2039_s2 + $0x38] sm:$0xff] }
 0x71f   :  { %v1958_v16 = vpop.f32.mrf.mxu1 }
 0x720   :  { %v745_v59 = vadd.f32 %v1967_v23, %v1958_v16  ;;  %v1561_v16 = vld [vmem:[%s2039_s2 + $0x30] sm:$0xff] }
 0x725   :  { %v1699_v17 = vpop.f32.mrf.mxu1 }
 0x726   :  { %v838_v21 = vadd.f32 %v1699_v17, %v1537_v18  ;;  %v1565_v17 = vld [vmem:[%s2042_s5 + $0x18] sm:$0xff] }
 0x727   :  { %v832_v19 = vpop.f32.mrf.mxu1 }
 0x728   :  { %v833_v20 = vadd.f32 %v1537_v18, %v832_v19 }
 0x72a   :  { %1702 = vmatprep.mubr.msk.f32.mxu0 %vm123_vm1, %v833_v20 }
 0x72b   :  { %1703 = vmatmul.mubr.msk.f32.vlgmr.msra.gmra.mxu0 %vm123_vm1, %v838_v21 }
 0x72c   :  { %1706 = vmatpush3.msra.mxu0 %v1544_v38 }
 0x72d   :  { %1707 = vmatprep.subr.mxu0 %v1543_v39 }
 0x72e   :  { %1708 = vmatpush3.msra.mxu0 %v1543_v39 }
 0x72f   :  { %1717 = vmatprep.subr.mxu0 %v1553_v40 }
 0x7eb   :  { %v1704_v24 = vpop.f32.mrf.mxu0 }
 0x7ec   :  { %v927_v25 = vsel %vm205_vm2, %v1704_v24, -inf }
 0x7ed   :  { %928 = vmax.xlane.f32.xlu1 %v927_v25  ;;  %v915_v26 = vpop.f32.mrf.mxu0 }
 0x7ee   :  { %v924_v27 = vsel %vm205_vm2, %v915_v26, -inf }
 0x7ef   :  { %925 = vmax.xlane.f32.xlu0 %v924_v27  ;;  %v1568_v27 = vld [vmem:[%s2043_s6] ss:$0 sm:$0xff] }
 0x876   :  { %v929_v28 = vpop.xlane.xlu1 %928 }
 0x877   :  { %v931_v29 = vsub.f32 %v1704_v24, %v929_v28 }
 0x878   :  { %v926_v30 = vpop.xlane.xlu0 %925 }
 0x879   :  { %v934_v31 = vmul.f32 1.442695, %v931_v29  ;;  %v930_v32 = vsub.f32 %v915_v26, %v926_v30 }
 0x87b   :  { %1764 = vpow2.f32 %v934_v31  ;;  %v932_v33 = vmul.f32 1.442695, %v930_v32 }
 0x87d   :  { %1766 = vpow2.f32 %v932_v33 }
 0x888   :  { %v1765_v34 = vpop.eup %1764 }
 0x889   :  { %v939_v35 = vsel %vm205_vm2, %v1765_v34, 0.0 }
 0x88a   :  { %v1767_v36 = vpop.eup %1766  ;;  %940 = vadd.xlane.f32.xlu1 %v939_v35 }
 0x88b   :  { %v936_v37 = vsel %vm205_vm2, %v1767_v36, 0.0 }
 0x88c   :  { %937 = vadd.xlane.f32.xlu0 %v936_v37 }
 0x913   :  { %v941_v41 = vpop.xlane.xlu1 %940 }
 0x914   :  { %1768 = vrcp.f32 %v941_v41 }
 0x915   :  { %v938_v42 = vpop.xlane.xlu0 %937 }
 0x916   :  { %1770 = vrcp.f32 %v938_v42 }
 0x921   :  { %v1769_v43 = vpop.eup %1768 }
 0x922   :  { %v945_v46 = vmul.f32 %v1769_v43, %v1765_v34 }
 0x923   :  { %v1771_v44 = vpop.eup %1770 }
 0x924   :  { %v944_v45 = vmul.f32 %v1771_v44, %v1767_v36 }
 0x926   :  { %1709 = vmatprep.mubr.msk.f32.mxu0 %vm205_vm2, %v944_v45 }
 0x927   :  { %1710 = vmatmul.mubr.msk.f32.vlgmr.msra.gmra.mxu0 %vm205_vm2, %v945_v46 }
 0x928   :  { %1718 = vmatpush3.msra.mxu0 %v1553_v40  ;;  %1725 = vmatprep.mubr.msk.f32.mxu0 %vm40_vm0, %v1854_v2  ;;  %v1558_v2 = vld [vmem:[%s2038_s1 + $0x18] sm:$0xff] }
 0x929   :  { %1719 = vmatprep.subr.mxu0 %v1552_v47  ;;  %1728 = vmatprep.subr.mxu1 %v1558_v2 }
 0x92a   :  { %1720 = vmatpush3.msra.mxu0 %v1552_v47 }
 0x92b   :  { %1721 = vmatprep.subr.mxu0 %v1551_v48 }
 0x92c   :  { %1722 = vmatpush3.msra.mxu0 %v1551_v48 }
 0x92d   :  { %1723 = vmatprep.subr.mxu0 %v1550_v49 }
 0x92e   :  { %1724 = vmatpush3.msra.mxu0 %v1550_v49 }
 0x92f   :  { %1726 = vmatmul.mubr.msk.f32.vlgmr.msra.gmra.mxu0 %vm40_vm0, %v1867_v5  ;;  %v1555_v5 = vld [vmem:[%s2041_s4 + $0x3] ss:$0 sm:$0xff]  ;;  %1740 = vmatprep.subr.mxu0 %v1565_v17 }
 0x930   :  { %1741 = vmatpush3.msra.mxu0 %v1565_v17 }
 0x9e7   :  { %v1711_v51 = vpop.f32.mrf.mxu0 }
 0x9e9   :  { %v1021_v52 = vpop.f32.mrf.mxu0 }
 0x9ea   :  { %1714 = vmatprep.mubr.msk.f32.mxu1 %vm123_vm1, %v1021_v52 }
 0x9eb   :  { %1715 = vmatmul.mubr.msk.f32.vlgmr.msra.gmra.mxu1 %vm123_vm1, %v1711_v51 }
 0x9ec   :  { %1729 = vmatpush3.msra.mxu1 %v1558_v2 }
 0x9ed   :  { %1733 = vmatprep.subr.mxu1 %v1562_v15 }
 0x9ef   :  { %v1727_v53 = vpop.f32.mrf.mxu0 }
 0x9f0   :  { %v1200_v56 = vadd.f32 %v1727_v53, %v1555_v5 }
 0x9f1   :  { %v1194_v54 = vpop.f32.mrf.mxu0 }
 0x9f2   :  { %v1195_v55 = vadd.f32 %v1555_v5, %v1194_v54 }
 0x9f4   :  { %1730 = vmatprep.mubr.msk.f32.mxu1 %vm123_vm1, %v1195_v55 }
 0x9f5   :  { %1731 = vmatmul.mubr.msk.f32.vlgmr.msra.gmra.mxu1 %vm123_vm1, %v1200_v56 }
 0x9f6   :  { %1734 = vmatpush3.msra.mxu1 %v1562_v15 }
 0x9f7   :  { %1735 = vmatprep.subr.mxu1 %v1561_v16 }
 0x9f8   :  { %1736 = vmatpush3.msra.mxu1 %v1561_v16 }
 0xaab   :  { %v1716_v58 = vpop.f32.mrf.mxu1 }
 0xaac   :  { %v1114_v60 = vadd.f32 %v1716_v58, %v750_v57 }
 0xaad   :  { %v1104_v61 = vpop.f32.mrf.mxu1 }
 0xaae   :  { %v1113_v62 = vadd.f32 %v1104_v61, %v745_v59 }
 0xab5   :  { %v1732_v63 = vpop.f32.mrf.mxu1 }
 0xab6   :  { %v1289_v0 = vsel %vm205_vm2, %v1732_v63, -inf }
 0xab7   :  { %1290 = vmax.xlane.f32.xlu1 %v1289_v0  ;;  %v1277_v1 = vpop.f32.mrf.mxu1 }
 0xab8   :  { %v1286_v3 = vsel %vm205_vm2, %v1277_v1, -inf }
 0xab9   :  { %1287 = vmax.xlane.f32.xlu0 %v1286_v3 }
 0xb40   :  { %v1291_v4 = vpop.xlane.xlu1 %1290 }
 0xb41   :  { %v1293_v6 = vsub.f32 %v1732_v63, %v1291_v4 }
 0xb42   :  { %v1288_v7 = vpop.xlane.xlu0 %1287 }
 0xb43   :  { %v1296_v8 = vmul.f32 1.442695, %v1293_v6  ;;  %v1292_v9 = vsub.f32 %v1277_v1, %v1288_v7 }
 0xb45   :  { %1772 = vpow2.f32 %v1296_v8  ;;  %v1294_v10 = vmul.f32 1.442695, %v1292_v9 }
 0xb47   :  { %1774 = vpow2.f32 %v1294_v10 }
 0xb52   :  { %v1773_v11 = vpop.eup %1772 }
 0xb53   :  { %v1301_v12 = vsel %vm205_vm2, %v1773_v11, 0.0 }
 0xb54   :  { %v1775_v13 = vpop.eup %1774  ;;  %1302 = vadd.xlane.f32.xlu1 %v1301_v12 }
 0xb55   :  { %v1298_v14 = vsel %vm205_vm2, %v1775_v13, 0.0 }
 0xb56   :  { %1299 = vadd.xlane.f32.xlu0 %v1298_v14 }
 0xbdd   :  { %v1303_v18 = vpop.xlane.xlu1 %1302 }
 0xbde   :  { %1776 = vrcp.f32 %v1303_v18 }
 0xbdf   :  { %v1300_v19 = vpop.xlane.xlu0 %1299 }
 0xbe0   :  { %1778 = vrcp.f32 %v1300_v19 }
 0xbeb   :  { %v1777_v20 = vpop.eup %1776 }
 0xbec   :  { %v1307_v23 = vmul.f32 %v1777_v20, %v1773_v11 }
 0xbed   :  { %v1779_v21 = vpop.eup %1778 }
 0xbee   :  { %v1306_v22 = vmul.f32 %v1779_v21, %v1775_v13 }
 0xbf0   :  { %1737 = vmatprep.mubr.msk.f32.mxu1 %vm205_vm2, %v1306_v22 }
 0xbf1   :  { %1738 = vmatmul.mubr.msk.f32.vlgmr.msra.gmra.mxu1 %vm205_vm2, %v1307_v23 }
 0xcb1   :  { %v1739_v24 = vpop.f32.mrf.mxu1 }
 0xcb3   :  { %v1383_v25 = vpop.f32.mrf.mxu1 }
 0xcb4   :  { %1742 = vmatprep.mubr.msk.f32.mxu0 %vm123_vm1, %v1383_v25 }
 0xcb5   :  { %1743 = vmatmul.mubr.msk.f32.vlgmr.msra.gmra.mxu0 %vm123_vm1, %v1739_v24 }
 0xd75   :  { %v1744_v26 = vpop.f32.mrf.mxu0 }
 0xd76   :  { %v1476_v28 = vadd.f32 %v1744_v26, %v1114_v60 }
 0xd77   :  { %v1466_v29 = vpop.f32.mrf.mxu0 }
 0xd78   :  { %v1485_v30 = vadd.f32 %v1568_v27, %v1476_v28  ;;  %v1475_v31 = vadd.f32 %v1466_v29, %v1113_v62 }
 0xd7a   :  { %1488 = vst.msk [vmem:[#allocation2 + $0x8] sm:$0xff] %vm1486_vm3, %v1485_v30  ;;  %v1484_v32 = vadd.f32 %v1568_v27, %v1475_v31 }
 0xd7c   :  { %1487 = vst.msk [vmem:[#allocation2] sm:$0xff] %vm1486_vm3, %v1484_v32 }
 0xd7d   :  { %1791 = shalt.err (!%p1788_p4)
}
 0xd7e   :  { %s1803_s28 = smov 128   ;;  %s1804_s6 = smov 8  }
 0xd7f   :  { %1500 = dma.vmem_to_hbm [thread:$0]  %s1495_s26, 256, %s2044_s7, [#allocation3], %s1803_s28, %s1803_s28, %s1804_s6  }
 0xd80   :  { %1800 = dma.done.wait [#allocation3], 256  }
 0xd81   :  { %1801 = vsyncadd [#allocation3], 4294967040 }
 0xd82   :  { %1504 = vsyncpa [#allocation3], 1 }

</bundles_post_ra>
